<compile_context>
chip_gen: v6e
topology: v6e:2x2x1
jax: 0.10.0
libtpu: 0.0.40
codegen_flags: <defaults>
</compile_context>

<pallas_src>
import numpy as np
import jax
import jax.numpy as jnp
from jax import lax
from jax.experimental import pallas as pl
from jax.experimental.pallas import tpu as pltpu


def _partition_linear_row_kernel(ii_ref, x_ref, o_ref):
    # ii_ref: (1, tn) int32  -- argmax row index per output column (-1 => padded col)
    # x_ref : (tm, O)        -- row tile of flattened input, native dtype
    # o_ref : (tm, tn)       -- output tile
    ii = ii_ref[...]                                              # (1, tn)
    o_dim = x_ref.shape[1]
    tn = ii.shape[1]
    # One-hot selection matrix for this column block: bb[o, j] = (o == ii[j]).
    row_ids = lax.broadcasted_iota(jnp.int32, (o_dim, tn), 0)     # (O, tn)
    bb = (row_ids == ii).astype(x_ref.dtype)                      # (O, tn)
    y = jnp.dot(x_ref[...], bb, preferred_element_type=jnp.float32)  # (tm, tn) f32
    o_ref[...] = y.astype(o_ref.dtype)


def _round_up(a, b):
    return (a + b - 1) // b * b


def partition_linear_row(x, weight, *, tm=256, tn=256):
    """y = x @ bb, where bb is the one-hot argmax-selection matrix of `weight`.

    x:      (..., out_features)
    weight: (out_features, in_features)
    returns (..., in_features)
    """
    O, I = weight.shape
    assert x.shape[-1] == O, "last dim of input must equal out_features"

    lead = x.shape[:-1]
    M = int(np.prod(lead)) if lead else 1
    x2 = x.reshape(M, O)

    # Hoisted out of the kernel: one cheap XLA reduction over the weight, done once.
    ii = jnp.argmax(weight, axis=0).astype(jnp.int32).reshape(1, I)   # (1, I)

    # Tile sizes: sublane-aligned row tile, lane-dense (>=128) column tile,
    # clipped to the (padded) problem so tiny shapes don't over-allocate.
    row_align = 16 if x2.dtype == jnp.bfloat16 else 8
    tm_eff = _round_up(min(tm, _round_up(M, row_align)), row_align)
    tn_eff = _round_up(min(tn, _round_up(I, 128)), 128)

    Mp = _round_up(M, tm_eff)
    Ip = _round_up(I, tn_eff)

    if Mp != M:
        x2 = jnp.pad(x2, ((0, Mp - M), (0, 0)))
    if Ip != I:
        # Padded columns get index -1 -> all-zero one-hot column -> zero output.
        ii = jnp.pad(ii, ((0, 0), (0, Ip - I)), constant_values=-1)

    grid = (Mp // tm_eff, Ip // tn_eff)

    y2 = pl.pallas_call(
        _partition_linear_row_kernel,
        out_shape=jax.ShapeDtypeStruct((Mp, Ip), x.dtype),
        grid_spec=pltpu.PrefetchScalarGridSpec(
            num_scalar_prefetch=0,
            grid=grid,
            in_specs=[
                pl.BlockSpec((1, tn_eff), lambda i, j: (0, j)),    # ii column tile
                pl.BlockSpec((tm_eff, O), lambda i, j: (i, 0)),    # x row tile (full O)
            ],
            out_specs=pl.BlockSpec((tm_eff, tn_eff), lambda i, j: (i, j)),
        ),
        compiler_params=pltpu.CompilerParams(
            dimension_semantics=("parallel", "parallel")),
    )(ii, x2)

    y2 = y2[:M, :I]
    return y2.reshape(*lead, I)


def init_params(key, in_features, out_features, bias=True):
    """Deterministic re-implementation of reset_parameters()."""
    stdv = 1.0 / np.sqrt(in_features)
    kw, kb = jax.random.split(key)
    weight = jax.random.uniform(
        kw, (out_features, in_features), jnp.float32, minval=-stdv, maxval=stdv)
    b = None
    if bias:
        b = jax.random.uniform(
            kb, (out_features,), jnp.float32, minval=-stdv, maxval=stdv)
    return weight, b  # bias is unused by forward(), kept for parity with __init__


def reference(x, weight):
    """Plain-JAX reference of the PyTorch forward."""
    O, I = weight.shape
    ii = jnp.argmax(weight, axis=0)                       # (I,)
    bb = jnp.zeros((O, I), jnp.float32).at[ii, jnp.arange(I)].set(1.0)
    return x @ bb


if __name__ == "__main__":
    key = jax.random.PRNGKey(0)

    # Case 1: toy module shape (in_features=32, out_features=64), x: (2, 8, 64).
    in_features, out_features = 32, 64
    kx, kp, key = jax.random.split(key, 3)
    weight, _bias = init_params(kp, in_features, out_features, bias=True)
    x = jax.random.normal(kx, (2, 8, out_features), jnp.float32)

    y = jax.block_until_ready(partition_linear_row(x, weight))
    assert y.shape == (2, 8, in_features)
    np.testing.assert_allclose(
        np.asarray(y), np.asarray(reference(x, weight)), rtol=1e-5, atol=1e-5)

    # Case 2: ragged shapes + bf16 input (exercises padding and lane tiling).
    in_features2, out_features2 = 160, 96
    kx2, kp2, key = jax.random.split(key, 3)
    weight2, _ = init_params(kp2, in_features2, out_features2, bias=False)
    xb = jax.random.normal(kx2, (3, 70, out_features2), jnp.bfloat16)

    yb = jax.block_until_ready(partition_linear_row(xb, weight2))
    assert yb.shape == (3, 70, in_features2)
    ref2 = reference(xb.astype(jnp.float32), weight2)
    np.testing.assert_allclose(
        np.asarray(yb.astype(jnp.float32)), np.asarray(ref2), rtol=1e-2, atol=1e-2)

    print("KERNEL_OK")
</pallas_src>

<mosaic_0001>
module attributes {stable_mosaic.version = 11 : i64} {
  func.func @_partition_linear_row_kernel(%arg0: i32, %arg1: i32, %arg2: memref<1x128xi32, #tpu.memory_space<vmem>>, %arg3: memref<16x64xf32, #tpu.memory_space<vmem>>, %arg4: memref<16x128xf32, #tpu.memory_space<vmem>>) attributes {dimension_semantics = [#tpu.dimension_semantics<parallel>, #tpu.dimension_semantics<parallel>], iteration_bounds = array<i64: 1, 1>, scalar_prefetch = 0 : i64, scratch_operands = 0 : i64, tpu.core_type = #tpu.core_type<tc>, window_params = [{transform_indices = @transform_0, window_bounds = array<i64: 1, 128>}, {transform_indices = @transform_1, window_bounds = array<i64: 16, 64>}, {transform_indices = @transform_2, window_bounds = array<i64: 16, 128>}]} {
    %c0 = arith.constant 0 : index
    %c0_0 = arith.constant 0 : index
    %0 = vector.load %arg2[%c0, %c0_0] : memref<1x128xi32, #tpu.memory_space<vmem>>, vector<1x128xi32>
    %1 = tpu.iota {dimensions = array<i32: 0>} : vector<64x128xi32>
    %2 = vector.broadcast %0 : vector<1x128xi32> to vector<64x128xi32>
    %3 = arith.cmpi eq, %1, %2 : vector<64x128xi32>
    %4 = arith.extui %3 : vector<64x128xi1> to vector<64x128xi32>
    %5 = arith.sitofp %4 : vector<64x128xi32> to vector<64x128xf32>
    %c0_1 = arith.constant 0 : index
    %c0_2 = arith.constant 0 : index
    %6 = vector.load %arg3[%c0_1, %c0_2] : memref<16x64xf32, #tpu.memory_space<vmem>>, vector<16x64xf32>
    %cst = arith.constant dense<0.000000e+00> : vector<16x128xf32>
    %7 = tpu.matmul %6, %5, %cst {dimension_numbers = #tpu.dot_dimension_numbers<[1], [0], [0], [1], [0, 0, 1, 1], [], []>} : vector<16x64xf32>, vector<64x128xf32>, vector<16x128xf32> -> vector<16x128xf32>
    %c0_3 = arith.constant 0 : index
    %c0_4 = arith.constant 0 : index
    %8 = vector.load %arg4[%c0_3, %c0_4] : memref<16x128xf32, #tpu.memory_space<vmem>>, vector<16x128xf32>
    tpu.vector_store %arg4[%c0_3, %c0_4], %7 {strides = array<i32>} : memref<16x128xf32, #tpu.memory_space<vmem>>, vector<16x128xf32>,
    return
  }
  func.func @transform_0(%arg0: i32, %arg1: i32) -> (i32, i32) {
    %c0_i32 = arith.constant 0 : i32
    %c0_i32_0 = arith.constant 0 : i32
    return %c0_i32, %arg1 : i32, i32
  }
  func.func @transform_1(%arg0: i32, %arg1: i32) -> (i32, i32) {
    %c0_i32 = arith.constant 0 : i32
    %c0_i32_0 = arith.constant 0 : i32
    return %arg0, %c0_i32 : i32, i32
  }
  func.func @transform_2(%arg0: i32, %arg1: i32) -> (i32, i32) {
    %c0_i32 = arith.constant 0 : i32
    return %arg0, %arg1 : i32, i32
  }
}

</mosaic_0001>

<bundles_post_ra>
// kernel: tpu_custom_call.1
= control target key start
LH: loop header
LB: loop body
LE: loop exit
PB: predicated region body
PF: predicated region fallthrough
CT: control target
= control target key end

     0   :  { %7 = vsyncpa [#allocation3], 0  ;;  %s338_s0 = inlined_call_operand.hbm [shape: s32[1,128], index: 0, kind: input, shape index: {}]   ;;  %s339_s1 = inlined_call_operand.hbm [shape: f32[16,64], index: 1, kind: input, shape index: {}]   ;;  %s340_s2 = inlined_call_operand.hbm [shape: f32[16,128], index: 2, kind: output, shape index: {}]  }
   0x1   :  { %8 = vsyncpa [#allocation6], 0 }
   0x2   :  { %9 = vsyncpa [#allocation4], 0  ;;  %s300_s9 = smov [#allocation2]   ;;  %s301_s11 = smov [#allocation5]  }
   0x3   :  { %s16_s10 = sshll.u32 %s300_s9, 4  ;;  %s25_s12 = sshll.u32 %s301_s11, 4  ;;  %s17_s10 = int_to_ptr.vmem [resolvable:$true] %s16_s10  ;;  %s26_s12 = int_to_ptr.vmem [resolvable:$true] %s25_s12 }
   0x4   :  { %s242_s13 = scalar_lea.vmem %s17_s10, 16  ;;  %s246_s14 = scalar_lea.vmem %s17_s10, 32 }
   0x5   :  { %p243_p0 = scmp.ne.s32.totalorder %s17_s10, %s242_s13  ;;  %p247_p1 = scmp.lt.s32.totalorder %s17_s10, %s17_s10 }
   0x6   :  { %p248_p2 = scmp.lt.s32.totalorder %s246_s14, %s242_s13 }
   0x8   :  { %p249_p3 = por %p248_p2, %p247_p1 }
   0xa   :  { %p250_p4 = pnand %p249_p3, %p243_p0 }
   0xc   :  { %253 = shalt.err (!%p250_p4)
}
   0xd   :  { %19 = dma.hbm_to_vmem [thread:$0]  %s338_s0, 16, %s17_s10, [#allocation3]  }
   0xe   :  { %s262_s17 = scalar_lea.vmem %s26_s12, 256  ;;  %p267_p6 = scmp.lt.s32.totalorder %s26_s12, %s26_s12 }
   0xf   :  { %p263_p5 = scmp.ne.s32.totalorder %s26_s12, %s262_s17  ;;  %p268_p7 = scmp.lt.s32.totalorder %s262_s17, %s262_s17 }
  0x11   :  { %p269_p8 = por %p268_p7, %p267_p6 }
  0x13   :  { %p270_p9 = pnand %p269_p8, %p263_p5 }
  0x15   :  { %273 = shalt.err (!%p270_p9)
}
  0x16   :  { %s302_s18 = smov 128   ;;  %s303_s19 = smov 8  }
  0x17   :  { %31 = dma.hbm_to_vmem [thread:$0]  %s339_s1, 256, %s26_s12, [#allocation6], %s302_s18, %s302_s18, %s303_s19  }
  0x18   :  { %294 = dma.done.wait [#allocation3], 16  }
  0x19   :  { %295 = vsyncadd [#allocation3], 4294967280 }
  0x1a   :  { %296 = dma.done.wait [#allocation6], 256  }
  0x1b   :  { %297 = vsyncadd [#allocation6], 4294967040  ;;  %v39_v0 = vlaneseq  ;;  %vm78_vm0 = vcmask 523264   ;;  %v180_v5 = vld [vmem:[#allocation2] ss:$0 sm:$0xff]  ;;  %v76_v6 = vld [vmem:[#allocation5] sm:$0xff] }
  0x1c   :  { %225 = vmatprep.mubr.msk.f32.mxu0 %vm78_vm0, %v76_v6  ;;  %v304_v8 = vmov 1.0   ;;  %v77_v12 = vld [vmem:[#allocation5 + $0x8] sm:$0xff]  ;;  %s305_s0 = smov [#allocation7]  }
  0x1d   :  { %v40_v1 = vshrl.u32 %v39_v0, 7  ;;  %s167_s1 = sshll.u32 %s305_s0, 4  ;;  %s168_s1 = int_to_ptr.vmem [resolvable:$true] %s167_s1 }
  0x1e   :  { %s274_s22 = scalar_lea.vmem %s168_s1, 256  ;;  %p279_p11 = scmp.lt.s32.totalorder %s168_s1, %s168_s1 }
  0x1f   :  { %v47_v2 = vadd.s32 56, %v40_v1  ;;  %v46_v3 = vadd.s32 48, %v40_v1  ;;  %v45_v4 = vadd.s32 40, %v40_v1  ;;  %v44_v7 = vadd.s32 32, %v40_v1  ;;  %p275_p10 = scmp.ne.s32.totalorder %s168_s1, %s274_s22  ;;  %p280_p12 = scmp.lt.s32.totalorder %s274_s22, %s274_s22 }
  0x20   :  { %v43_v9 = vadd.s32 24, %v40_v1  ;;  %v42_v10 = vadd.s32 16, %v40_v1  ;;  %v41_v11 = vadd.s32 8, %v40_v1  ;;  %vm52_vm8 = vcmp.eq.s32.totalorder %v40_v1, %v180_v5 }
  0x21   :  { %vm59_vm1 = vcmp.eq.s32.totalorder %v47_v2, %v180_v5  ;;  %vm58_vm2 = vcmp.eq.s32.totalorder %v46_v3, %v180_v5  ;;  %vm57_vm3 = vcmp.eq.s32.totalorder %v45_v4, %v180_v5  ;;  %vm56_vm4 = vcmp.eq.s32.totalorder %v44_v7, %v180_v5  ;;  %p281_p13 = por %p280_p12, %p279_p11 }
  0x22   :  { %209 = vmatprep.subr.msk.mxu0 %vm59_vm1, %v304_v8  ;;  %vm55_vm5 = vcmp.eq.s32.totalorder %v43_v9, %v180_v5  ;;  %vm54_vm6 = vcmp.eq.s32.totalorder %v42_v10, %v180_v5  ;;  %vm53_vm7 = vcmp.eq.s32.totalorder %v41_v11, %v180_v5 }
  0x23   :  { %210 = vmatpush3.msk.msra.mxu0 %vm59_vm1, %v304_v8  ;;  %p282_p0 = pnand %p281_p13, %p275_p10 }
  0x24   :  { %211 = vmatprep.subr.msk.mxu0 %vm58_vm2, %v304_v8 }
  0x25   :  { %212 = vmatpush3.msk.msra.mxu0 %vm58_vm2, %v304_v8 }
  0x26   :  { %213 = vmatprep.subr.msk.mxu0 %vm57_vm3, %v304_v8 }
  0x27   :  { %214 = vmatpush3.msk.msra.mxu0 %vm57_vm3, %v304_v8 }
  0x28   :  { %215 = vmatprep.subr.msk.mxu0 %vm56_vm4, %v304_v8 }
  0x29   :  { %216 = vmatpush3.msk.msra.mxu0 %vm56_vm4, %v304_v8 }
  0x2a   :  { %217 = vmatprep.subr.msk.mxu0 %vm55_vm5, %v304_v8 }
  0x2b   :  { %218 = vmatpush3.msk.msra.mxu0 %vm55_vm5, %v304_v8 }
  0x2c   :  { %219 = vmatprep.subr.msk.mxu0 %vm54_vm6, %v304_v8 }
  0x2d   :  { %220 = vmatpush3.msk.msra.mxu0 %vm54_vm6, %v304_v8 }
  0x2e   :  { %221 = vmatprep.subr.msk.mxu0 %vm53_vm7, %v304_v8 }
  0x2f   :  { %222 = vmatpush3.msk.msra.mxu0 %vm53_vm7, %v304_v8 }
  0x30   :  { %223 = vmatprep.subr.msk.mxu0 %vm52_vm8, %v304_v8 }
  0x31   :  { %224 = vmatpush3.msk.msra.mxu0 %vm52_vm8, %v304_v8 }
  0x32   :  { %226 = vmatmul.mubr.msk.f32.vlgmr.msra.gmra.mxu0 %vm78_vm0, %v77_v12 }
  0xf2   :  { %v227_v13 = vpop.f32.mrf.mxu0 }
  0xf3   :  { %161 = vst [vmem:[#allocation7 + $0x8] sm:$0xff] %v227_v13 }
  0xf4   :  { %v151_v14 = vpop.f32.mrf.mxu0 }
  0xf5   :  { %160 = vst [vmem:[#allocation7] sm:$0xff] %v151_v14 }
  0xf6   :  { %285 = shalt.err (!%p282_p0)
}
  0xf7   :  { %173 = dma.vmem_to_hbm [thread:$0]  %s168_s1, 256, %s340_s2, [#allocation4], %s302_s18, %s302_s18, %s303_s19  }
  0xf8   :  { %298 = dma.done.wait [#allocation4], 256  }
  0xf9   :  { %299 = vsyncadd [#allocation4], 4294967040 }
  0xfa   :  { %177 = vsyncpa [#allocation3], 1 }
  0xfb   :  { %178 = vsyncpa [#allocation6], 1 }
  0xfc   :  { %179 = vsyncpa [#allocation4], 1 }

</bundles_post_ra>
